<compile_context>
chip_gen: v7x
topology: tpu7x:2x2x1
jax: 0.10.0
libtpu: 0.0.40
codegen_flags: <defaults>
</compile_context>

<pallas_src>
import jax
import jax.numpy as jnp
from jax.experimental import pallas as pl
from jax.experimental.pallas import tpu as pltpu


def _round_up(n, m):
    return ((n + m - 1) // m) * m


def mlp_kernel(x_ref, w1t_ref, b1_ref, w2t_ref, b2_ref, w3_ref, b3_ref, o_ref):
    """One batch tile, carried batch-on-lanes (lane-dense) end to end.

    x_ref:  (TB, D)  input rows for this tile
    w1t:    (16, D)  W1^T          b1: (16, 1) column
    w2t:    (8, 16)  W2^T          b2: (8, 1) column
    w3:     (8, 1)   final weight column     b3: (1, 1) scalar in SMEM
    o_ref:  (1, TB)  lane-dense output row (batch along lanes)
    """
    x = x_ref[...]                                                    # (TB, D)

    # Layer 1: transposed contraction (q@k^T pattern) -> (16, TB), batch on lanes.
    h1 = jax.lax.dot_general(
        w1t_ref[...], x,
        dimension_numbers=(((1,), (1,)), ((), ())),
        preferred_element_type=jnp.float32,
    )                                                                 # (16, TB)
    h1 = jnp.maximum(h1 + b1_ref[...], 0.0)

    # Layer 2: (8,16) @ (16,TB) -> (8, TB), still lane-dense.
    h2 = jax.lax.dot_general(
        w2t_ref[...], h1,
        dimension_numbers=(((1,), (0,)), ((), ())),
        preferred_element_type=jnp.float32,
    )                                                                 # (8, TB)
    h2 = jnp.maximum(h2 + b2_ref[...], 0.0)

    # Layer 3 (Linear(8,1)): 8 lane-dense VPU multiply-adds + tiny 8-sublane
    # reduce instead of an M=1 MXU matmul.
    y = jnp.sum(h2 * w3_ref[...], axis=0, keepdims=True)              # (1, TB)
    o_ref[...] = y + b3_ref[0, 0]


def budget_model_forward(x, params, block_rows=8192):
    """x: [B, D] float32; params: (w1,b1,w2,b2,w3,b3); returns [B, 1] float32."""
    w1, b1, w2, b2, w3, b3 = params
    B, D = x.shape
    H1 = w1.shape[1]          # 16
    H2 = w2.shape[1]          # 8

    # Batch tile: multiple of 128 (lane-aligned -> unmasked vst on the output
    # row).  Aim for >= 2 tiles so both v7x TensorCores get work under the
    # "parallel" grid axis; tiny batches clamp to a single 128-row tile.
    target = min(block_rows, max(-(-B // 2), 1))
    tb = max(128, _round_up(min(target, B), 128))
    num_tiles = pl.cdiv(B, tb)
    b_pad = num_tiles * tb
    if b_pad != B:
        x = jnp.pad(x, ((0, b_pad - B), (0, 0)))

    # Transposed / column-shaped parameters for the batch-on-lanes layout.
    w1t = w1.T                      # (16, D)
    b1c = b1.reshape(H1, 1)         # (16, 1)
    w2t = w2.T                      # (8, 16)
    b2c = b2.reshape(H2, 1)         # (8, 1)
    w3c = w3.reshape(H2, 1)         # (8, 1)
    b3s = b3.reshape(1, 1)          # (1, 1) scalar -> SMEM

    # Advisory cost estimate: the kernel is HBM-read-bound on x.
    param_bytes = 4 * (D * H1 + H1 + H1 * H2 + H2 + H2 + 1)
    cost = pl.CostEstimate(
        flops=2 * b_pad * (D * H1 + H1 * H2 + H2),
        transcendentals=0,
        bytes_accessed=b_pad * D * 4 + b_pad * 4 + param_bytes,
    )

    # Approximate VMEM footprint (x tile lane-pads D -> 128, double-buffered).
    lane_d = _round_up(D, 128)
    vmem_need = (2 * tb * lane_d * 4          # x double buffer
                 + 2 * tb * 4                 # output double buffer
                 + (H1 + H2 + 1) * tb * 4     # lane-dense intermediates
                 + (1 << 20))                 # weights/biases + slack
    compiler_params = pltpu.CompilerParams(
        # Independent batch tiles -> shard grid across both TCs on v7x.
        dimension_semantics=("parallel",),
        # Only raise the scoped-VMEM limit if the tiles actually need it
        # (conservative 16 MiB default on v5e); cap below v7x's 64 MiB physical.
        vmem_limit_bytes=(min(int(vmem_need * 3 // 2), 64 << 20)
                          if vmem_need > (16 << 20) else None),
    )

    out = pl.pallas_call(
        mlp_kernel,
        out_shape=jax.ShapeDtypeStruct((1, b_pad), jnp.float32),
        grid=(num_tiles,),
        in_specs=[
            pl.BlockSpec((tb, D), lambda i: (i, 0)),             # x: batch-tiled
            pl.BlockSpec((H1, D), lambda i: (0, 0)),             # W1^T: VMEM-resident
            pl.BlockSpec((H1, 1), lambda i: (0, 0)),             # b1 column
            pl.BlockSpec((H2, H1), lambda i: (0, 0)),            # W2^T
            pl.BlockSpec((H2, 1), lambda i: (0, 0)),             # b2 column
            pl.BlockSpec((H2, 1), lambda i: (0, 0)),             # W3 column
            pl.BlockSpec(memory_space=pltpu.MemorySpace.SMEM),   # b3 scalar
        ],
        out_specs=pl.BlockSpec((1, tb), lambda i: (0, i)),       # lane-dense row slab
        compiler_params=compiler_params,
        cost_estimate=cost,
    )(x, w1t, b1c, w2t, b2c, w3c, b3s)

    # (1, b_pad) lane-dense row -> (B, 1), dropping batch padding.
    return out.reshape(b_pad, 1)[:B]


def init_params(key, input_size):
    """Deterministic init mimicking PyTorch nn.Linear default U(-1/sqrt(fan_in), +1/sqrt(fan_in))."""
    dims = [(input_size, 16), (16, 8), (8, 1)]
    params = []
    keys = jax.random.split(key, 2 * len(dims))
    for li, (fan_in, fan_out) in enumerate(dims):
        bound = 1.0 / (fan_in ** 0.5)
        w = jax.random.uniform(keys[2 * li], (fan_in, fan_out),
                               minval=-bound, maxval=bound, dtype=jnp.float32)
        b = jax.random.uniform(keys[2 * li + 1], (1, fan_out),
                               minval=-bound, maxval=bound, dtype=jnp.float32)
        params.extend([w, b])
    return tuple(params)


if __name__ == "__main__":
    key = jax.random.PRNGKey(0)
    batch, input_size = 300, 32          # small; exercises 2 tiles + a padded tail
    k_x, k_p = jax.random.split(key)
    x = jax.random.normal(k_x, (batch, input_size), dtype=jnp.float32)
    params = init_params(k_p, input_size)

    fwd = jax.jit(budget_model_forward)
    out = jax.block_until_ready(fwd(x, params))

    # Reference in plain JAX (same math as the PyTorch module).
    w1, b1, w2, b2, w3, b3 = params
    ref = jnp.maximum(x @ w1 + b1, 0.0)
    ref = jnp.maximum(ref @ w2 + b2, 0.0)
    ref = ref @ w3 + b3

    assert out.shape == (batch, 1)
    assert jnp.allclose(out, ref, atol=1e-4, rtol=1e-4)

    print("KERNEL_OK")
</pallas_src>

<mosaic_0001>
module attributes {stable_mosaic.version = 11 : i64} {
  func.func @mlp_kernel(%arg0: i32, %arg1: memref<256x32xf32, #tpu.memory_space<vmem>>, %arg2: memref<16x32xf32, #tpu.memory_space<vmem>>, %arg3: memref<16x1xf32, #tpu.memory_space<vmem>>, %arg4: memref<8x16xf32, #tpu.memory_space<vmem>>, %arg5: memref<8x1xf32, #tpu.memory_space<vmem>>, %arg6: memref<8x1xf32, #tpu.memory_space<vmem>>, %arg7: memref<1x1xf32, #tpu.memory_space<smem>>, %arg8: memref<1x256xf32, #tpu.memory_space<vmem>>) attributes {dimension_semantics = [#tpu.dimension_semantics<parallel>], iteration_bounds = array<i64: 2>, scalar_prefetch = 0 : i64, scratch_operands = 0 : i64, tpu.core_type = #tpu.core_type<tc>, window_params = [{transform_indices = @transform_0, window_bounds = array<i64: 256, 32>}, {pipeline_mode = #tpu.pipeline_mode<synchronous>, transform_indices = @transform_1, window_bounds = array<i64: 16, 32>}, {pipeline_mode = #tpu.pipeline_mode<synchronous>, transform_indices = @transform_2, window_bounds = array<i64: 16, 1>}, {pipeline_mode = #tpu.pipeline_mode<synchronous>, transform_indices = @transform_3, window_bounds = array<i64: 8, 16>}, {pipeline_mode = #tpu.pipeline_mode<synchronous>, transform_indices = @transform_4, window_bounds = array<i64: 8, 1>}, {pipeline_mode = #tpu.pipeline_mode<synchronous>, transform_indices = @transform_5, window_bounds = array<i64: 8, 1>}, {transform_indices = @transform_6, window_bounds = array<i64: 1, 1>}, {transform_indices = @transform_7, window_bounds = array<i64: 1, 256>}]} {
    %c0 = arith.constant 0 : index
    %c0_0 = arith.constant 0 : index
    %0 = vector.load %arg1[%c0, %c0_0] : memref<256x32xf32, #tpu.memory_space<vmem>>, vector<256x32xf32>
    %c0_1 = arith.constant 0 : index
    %c0_2 = arith.constant 0 : index
    %1 = vector.load %arg2[%c0_1, %c0_2] : memref<16x32xf32, #tpu.memory_space<vmem>>, vector<16x32xf32>
    %cst = arith.constant dense<0.000000e+00> : vector<16x256xf32>
    %2 = tpu.matmul %1, %0, %cst {dimension_numbers = #tpu.dot_dimension_numbers<[1], [1], [0], [0], [0, 0, 1, 0], [], []>} : vector<16x32xf32>, vector<256x32xf32>, vector<16x256xf32> -> vector<16x256xf32>
    %c0_3 = arith.constant 0 : index
    %c0_4 = arith.constant 0 : index
    %3 = vector.load %arg3[%c0_3, %c0_4] : memref<16x1xf32, #tpu.memory_space<vmem>>, vector<16x1xf32>
    %4 = vector.broadcast %3 : vector<16x1xf32> to vector<16x256xf32>
    %5 = arith.addf %2, %4 : vector<16x256xf32>
    %cst_5 = arith.constant 0.000000e+00 : f32
    %6 = vector.broadcast %cst_5 : f32 to vector<16x256xf32>
    %7 = arith.maximumf %5, %6 : vector<16x256xf32>
    %c0_6 = arith.constant 0 : index
    %c0_7 = arith.constant 0 : index
    %8 = vector.load %arg4[%c0_6, %c0_7] : memref<8x16xf32, #tpu.memory_space<vmem>>, vector<8x16xf32>
    %cst_8 = arith.constant dense<0.000000e+00> : vector<8x256xf32>
    %9 = tpu.matmul %8, %7, %cst_8 {dimension_numbers = #tpu.dot_dimension_numbers<[1], [0], [0], [1], [0, 0, 1, 1], [], []>} : vector<8x16xf32>, vector<16x256xf32>, vector<8x256xf32> -> vector<8x256xf32>
    %c0_9 = arith.constant 0 : index
    %c0_10 = arith.constant 0 : index
    %10 = vector.load %arg5[%c0_9, %c0_10] : memref<8x1xf32, #tpu.memory_space<vmem>>, vector<8x1xf32>
    %11 = vector.broadcast %10 : vector<8x1xf32> to vector<8x256xf32>
    %12 = arith.addf %9, %11 : vector<8x256xf32>
    %cst_11 = arith.constant 0.000000e+00 : f32
    %13 = vector.broadcast %cst_11 : f32 to vector<8x256xf32>
    %14 = arith.maximumf %12, %13 : vector<8x256xf32>
    %c0_12 = arith.constant 0 : index
    %c0_13 = arith.constant 0 : index
    %15 = vector.load %arg6[%c0_12, %c0_13] : memref<8x1xf32, #tpu.memory_space<vmem>>, vector<8x1xf32>
    %16 = vector.broadcast %15 : vector<8x1xf32> to vector<8x256xf32>
    %17 = arith.mulf %14, %16 : vector<8x256xf32>
    %cst_14 = arith.constant dense<0.000000e+00> : vector<256xf32>
    %18 = vector.multi_reduction <add>, %17, %cst_14 [0] : vector<8x256xf32> to vector<256xf32>
    %19 = vector.shape_cast %18 : vector<256xf32> to vector<1x256xf32>
    %c0_15 = arith.constant 0 : index
    %c0_16 = arith.constant 0 : index
    %20 = memref.load %arg7[%c0_15, %c0_16] : memref<1x1xf32, #tpu.memory_space<smem>>
    %21 = vector.broadcast %20 : f32 to vector<1x256xf32>
    %22 = arith.addf %19, %21 : vector<1x256xf32>
    %c0_17 = arith.constant 0 : index
    %c0_18 = arith.constant 0 : index
    %23 = vector.load %arg8[%c0_17, %c0_18] : memref<1x256xf32, #tpu.memory_space<vmem>>, vector<1x256xf32>
    tpu.vector_store %arg8[%c0_17, %c0_18], %22 {strides = array<i32>} : memref<1x256xf32, #tpu.memory_space<vmem>>, vector<1x256xf32>,
    return
  }
  func.func @transform_0(%arg0: i32) -> (i32, i32) {
    %c0_i32 = arith.constant 0 : i32
    %c0_i32_0 = arith.constant 0 : i32
    return %arg0, %c0_i32 : i32, i32
  }
  func.func @transform_1(%arg0: i32) -> (i32, i32) {
    %c0_i32 = arith.constant 0 : i32
    %c0_i32_0 = arith.constant 0 : i32
    %c0_i32_1 = arith.constant 0 : i32
    return %c0_i32, %c0_i32_0 : i32, i32
  }
  func.func @transform_2(%arg0: i32) -> (i32, i32) {
    %c0_i32 = arith.constant 0 : i32
    %c0_i32_0 = arith.constant 0 : i32
    %c0_i32_1 = arith.constant 0 : i32
    return %c0_i32, %c0_i32_0 : i32, i32
  }
  func.func @transform_3(%arg0: i32) -> (i32, i32) {
    %c0_i32 = arith.constant 0 : i32
    %c0_i32_0 = arith.constant 0 : i32
    %c0_i32_1 = arith.constant 0 : i32
    return %c0_i32, %c0_i32_0 : i32, i32
  }
  func.func @transform_4(%arg0: i32) -> (i32, i32) {
    %c0_i32 = arith.constant 0 : i32
    %c0_i32_0 = arith.constant 0 : i32
    %c0_i32_1 = arith.constant 0 : i32
    return %c0_i32, %c0_i32_0 : i32, i32
  }
  func.func @transform_5(%arg0: i32) -> (i32, i32) {
    %c0_i32 = arith.constant 0 : i32
    %c0_i32_0 = arith.constant 0 : i32
    %c0_i32_1 = arith.constant 0 : i32
    return %c0_i32, %c0_i32_0 : i32, i32
  }
  func.func @transform_6(%arg0: i32) -> (i32, i32) {
    %c0_i32 = arith.constant 0 : i32
    %c0_i32_0 = arith.constant 0 : i32
    %c0_i32_1 = arith.constant 0 : i32
    return %c0_i32, %c0_i32_0 : i32, i32
  }
  func.func @transform_7(%arg0: i32) -> (i32, i32) {
    %c0_i32 = arith.constant 0 : i32
    %c0_i32_0 = arith.constant 0 : i32
    return %c0_i32, %arg0 : i32, i32
  }
}

</mosaic_0001>

<bundles_post_ra>
// kernel: budget_model_forward.1
= control target key start
LH: loop header
LB: loop body
LE: loop exit
PB: predicated region body
PF: predicated region fallthrough
CT: control target
= control target key end

     0   :  { %s892_s26 = smov 0   ;;  %s1014_s0 = inlined_call_operand.vmem [shape: f32[512,32], index: 0, kind: input, shape index: {}]   ;;  %s1015_s1 = inlined_call_operand.vmem [shape: f32[16,32], index: 1, kind: input, shape index: {}]   ;;  %s1016_s2 = inlined_call_operand.vmem [shape: f32[16,1], index: 2, kind: input, shape index: {}]   ;;  %s1017_s3 = inlined_call_operand.vmem [shape: f32[8,16], index: 3, kind: input, shape index: {}]   ;;  %s1018_s4 = inlined_call_operand.vmem [shape: f32[8,1], index: 4, kind: input, shape index: {}]   ;;  %s1019_s5 = inlined_call_operand.vmem [shape: f32[8,1], index: 5, kind: input, shape index: {}]   ;;  %s1020_s6 = inlined_call_operand.<no memory space> [shape: f32[1,1], index: 6, kind: input, shape index: {}]   ;;  %s1021_s7 = inlined_call_operand.vmem [shape: f32[1,512], index: 7, kind: output, shape index: {}]  }
   0x1   :  { %12 = sst [smem:[#allocation2]] %s1020_s6 }
   0x2 LB: > { %s692_s27 = sadd.s32 4294967295, %s844_s26   ;;  %p696_p0 = scmp.ge.s32.totalorder %s844_s26, 1  ;;  %s844_s26 = sphi %s892_s26, %s18_s26  }
   0x3   : > { %p239_p1 = scmp.lt.s32.totalorder %s844_s26, 3 }
   0x5   : > { %p240_p2 = pnand %p696_p0, %p239_p1 }
   0x6   : > { %s697_s28 = sshll.u32 (!%p240_p2), %s692_s27, 5  ;;  %vm327_vm0 = vcmask (!%p240_p2), 261120   ;;  %v905_v0 = vld [vmem:[%s1015_s1] sm:$0xff] (!%p240_p2)  ;;  %v846_v2 = vmov (!%p240_p2), 0   ;;  %v316_v3 = vld [vmem:[%s1016_s2 + $0x8] sm:$0xff] (!%p240_p2)  ;;  %v847_v54 = vmov (!%p240_p2), 0.0  }
   0x7   : > { %243 = sbr.rel (%p240_p2) target bundleno = 551 (0x227), region = 48  ;;  %v315_v1 = vld [vmem:[%s1016_s2] sm:$0xff] (!%p240_p2)  ;;  %p271_p3 = scmp.lt.s32.totalorder (!%p240_p2), %s697_s28, 63  ;;  %769 = vmatprep.mubr.msk.f32.mxu0 (!%p240_p2), %vm327_vm0, %v905_v0  ;;  %836 = vset.pattern.permute.xlu0 (!%p240_p2), %v846_v2  ;;  %vm922_vm1 = vmpackc.low (!%p240_p2), %vm327_vm0, %vm327_vm0  ;;  %v314_v53 = vld [vmem:[%s1015_s1 + $0x8] sm:$0xff] (!%p240_p2)  ;;  %vm518_vm2 = vcmask (!%p240_p2), 130048  }
   0x8   : > { %319 = vperm.xlu0 (!%p240_p2), %836, %v315_v1   ;;  %837 = vset.pattern.permute.xlu1 (!%p240_p2), %v846_v2  ;;  %v512_v55 = vld [vmem:[%s1018_s4] sm:$0xff] (!%p240_p2)  ;;  %s615_s23 = sld [smem:[#allocation2]] (!%p240_p2)  ;;  %s699_s24 = sshll.u32 (!%p240_p2), %s692_s27, 1 }
   0x9   : > { %586 = vmatprep.mubr.f32.mxu1 (!%p240_p2), %v847_v54  ;;  %515 = vperm.xlu1 (!%p240_p2), %837, %v512_v55   ;;  %v595_v56 = vld [vmem:[%s1019_s5] sm:$0xff] (!%p240_p2)  ;;  %p277_p4 = scmp.lt.s32.totalorder (!%p240_p2), %s699_s24, 3 }
   0xc   : > { %324 = vperm.xlu0 (!%p240_p2), %836, %v316_v3  }
   0xd   : > { %598 = vperm.xlu1 (!%p240_p2), %837, %v595_v56  }
   0xe   : > { %s1025_s28 = smov (!%p271_p3, %s697_s28), 63  ;;  %s1027_s24 = smov (!%p277_p4, %s699_s24), 3 }
   0xf   : > { %s698_s11 = sshll.u32 %s1025_s28, 3  ;;  %s279_s6 = scalar_lea.vmem %s1021_s7, %s1027_s24 }
  0x10   : > { %s918_s14 = scalar_lea.vmem %s1014_s0, %s698_s11 }
  0x11   : > { %v297_v5 = vld [vmem:[%s918_s14 + $0x80] sm:$0xff]  ;;  %v298_v6 = vld [vmem:[%s918_s14 + $0x88] sm:$0xff]  ;;  %v299_v10 = vld [vmem:[%s918_s14 + $0x90] sm:$0xff] }
  0x12   : > { %v281_v7 = vld [vmem:[%s918_s14] sm:$0xff]  ;;  %v773_v8 = vpack.c.bf16 %v298_v6, %v297_v5  ;;  %v282_v9 = vld [vmem:[%s918_s14 + $0x8] sm:$0xff]  ;;  %v300_v11 = vld [vmem:[%s918_s14 + $0x98] sm:$0xff] }
  0x13   : > { %v776_v12 = vpack.c.bf16 %v282_v9, %v281_v7  ;;  %v779_v13 = vpack.c.bf16 %v300_v11, %v299_v10  ;;  %v283_v14 = vld [vmem:[%s918_s14 + $0x10] sm:$0xff]  ;;  %v284_v15 = vld [vmem:[%s918_s14 + $0x18] sm:$0xff]  ;;  %v301_v16 = vld [vmem:[%s918_s14 + $0xa0] sm:$0xff] }
  0x14   : > { %775 = vmatprep.subr.msk.bf16.mxu0 %vm922_vm1, %v773_v8  ;;  %v302_v17 = vld [vmem:[%s918_s14 + $0xa8] sm:$0xff]  ;;  %v782_v18 = vpack.c.bf16 %v284_v15, %v283_v14  ;;  %v285_v20 = vld [vmem:[%s918_s14 + $0x20] sm:$0xff]  ;;  %v303_v22 = vld [vmem:[%s918_s14 + $0xb0] sm:$0xff] }
  0x15   : > { %778 = vmatpush3.bf16.xpose.msk.msra.mxu0 %vm922_vm1, %v776_v12  ;;  %v785_v19 = vpack.c.bf16 %v302_v17, %v301_v16  ;;  %v286_v21 = vld [vmem:[%s918_s14 + $0x28] sm:$0xff]  ;;  %v304_v23 = vld [vmem:[%s918_s14 + $0xb8] sm:$0xff]  ;;  %v287_v26 = vld [vmem:[%s918_s14 + $0x30] sm:$0xff] }
  0x16   : > { %781 = vmatprep.subr.msk.bf16.mxu0 %vm922_vm1, %v779_v13  ;;  %v788_v24 = vpack.c.bf16 %v286_v21, %v285_v20  ;;  %v791_v25 = vpack.c.bf16 %v304_v23, %v303_v22  ;;  %v288_v27 = vld [vmem:[%s918_s14 + $0x38] sm:$0xff]  ;;  %v305_v28 = vld [vmem:[%s918_s14 + $0xc0] sm:$0xff]  ;;  %v306_v29 = vld [vmem:[%s918_s14 + $0xc8] sm:$0xff] }
  0x17   : > { %v794_v30 = vpack.c.bf16 %v288_v27, %v287_v26  ;;  %v797_v31 = vpack.c.bf16 %v306_v29, %v305_v28  ;;  %v289_v32 = vld [vmem:[%s918_s14 + $0x40] sm:$0xff]  ;;  %v290_v33 = vld [vmem:[%s918_s14 + $0x48] sm:$0xff]  ;;  %v307_v34 = vld [vmem:[%s918_s14 + $0xd0] sm:$0xff]  ;;  %v848_v26 = vmov 1966171168   ;;  %v625_v28 = vlaneseq }
  0x18   : > { %v308_v35 = vld [vmem:[%s918_s14 + $0xd8] sm:$0xff]  ;;  %v800_v36 = vpack.c.bf16 %v290_v33, %v289_v32  ;;  %v291_v38 = vld [vmem:[%s918_s14 + $0x50] sm:$0xff]  ;;  %v309_v40 = vld [vmem:[%s918_s14 + $0xe0] sm:$0xff]  ;;  %v623_v27 = vunpack.c.l.s4 %v848_v26  ;;  %v616_v32 = vstv %s615_s23 }
  0x19   : > { %v803_v37 = vpack.c.bf16 %v308_v35, %v307_v34  ;;  %v292_v39 = vld [vmem:[%s918_s14 + $0x58] sm:$0xff]  ;;  %v310_v41 = vld [vmem:[%s918_s14 + $0xe8] sm:$0xff]  ;;  %v293_v44 = vld [vmem:[%s918_s14 + $0x60] sm:$0xff]  ;;  %v626_v35 = vshrl.u32 %v625_v28, 7  ;;  %vm639_vm3 = vcmp.lt.s32.totalorder %v625_v28, 256 }
  0x1a   : > { %v806_v42 = vpack.c.bf16 %v292_v39, %v291_v38  ;;  %v809_v43 = vpack.c.bf16 %v310_v41, %v309_v40  ;;  %v294_v45 = vld [vmem:[%s918_s14 + $0x68] sm:$0xff]  ;;  %v311_v46 = vld [vmem:[%s918_s14 + $0xf0] sm:$0xff]  ;;  %v312_v47 = vld [vmem:[%s918_s14 + $0xf8] sm:$0xff]  ;;  %v624_v34 = vunpack.c.0.s8 %v623_v27 }
  0x1b   : > { %v812_v48 = vpack.c.bf16 %v294_v45, %v293_v44  ;;  %v815_v49 = vpack.c.bf16 %v312_v47, %v311_v46  ;;  %v295_v50 = vld [vmem:[%s918_s14 + $0x70] sm:$0xff]  ;;  %v296_v51 = vld [vmem:[%s918_s14 + $0x78] sm:$0xff]  ;;  %v511_v9 = vld [vmem:[%s1017_s3] sm:$0xff] }
  0x1c   : > { %v818_v52 = vpack.c.bf16 %v296_v51, %v295_v50  ;;  %v627_v40 = vsub.s32 %v624_v34, %v626_v35 }
  0x1d   : > { %784 = vmatpush3.bf16.xpose.msk.msra.mxu0 %vm922_vm1, %v782_v18 }
  0x1e   : > { %787 = vmatprep.subr.msk.bf16.mxu0 %vm922_vm1, %v785_v19 }
  0x25   : > { %790 = vmatpush3.bf16.xpose.msk.msra.mxu0 %vm922_vm1, %v788_v24 }
  0x26   : > { %793 = vmatprep.subr.msk.bf16.mxu0 %vm922_vm1, %v791_v25 }
  0x2d   : > { %796 = vmatpush3.bf16.xpose.msk.msra.mxu0 %vm922_vm1, %v794_v30 }
  0x2e   : > { %799 = vmatprep.subr.msk.bf16.mxu0 %vm922_vm1, %v797_v31 }
  0x35   : > { %802 = vmatpush3.bf16.xpose.msk.msra.mxu0 %vm922_vm1, %v800_v36 }
  0x36   : > { %805 = vmatprep.subr.msk.bf16.mxu0 %vm922_vm1, %v803_v37 }
  0x3d   : > { %808 = vmatpush3.bf16.xpose.msk.msra.mxu0 %vm922_vm1, %v806_v42 }
  0x3e   : > { %811 = vmatprep.subr.msk.bf16.mxu0 %vm922_vm1, %v809_v43 }
  0x45   : > { %814 = vmatpush3.bf16.xpose.msk.msra.mxu0 %vm922_vm1, %v812_v48 }
  0x46   : > { %817 = vmatprep.subr.msk.bf16.mxu0 %vm922_vm1, %v815_v49 }
  0x4d   : > { %820 = vmatpush3.bf16.xpose.msk.msra.mxu0 %vm922_vm1, %v818_v52 }
  0x54   : > { %770 = vmatmul.mubr.msk.f32.vlgmr.msra.gmra.mrb[0].mxu0 %vm327_vm0, %v905_v0 }
  0x55   : > { %771 = vmatprep.mubr.msk.f32.mxu0 %vm327_vm0, %v314_v53 }
  0x58   : > { %772 = vmatmul.mubr.msk.f32.gmra.mrb[2].mxu0 %vm327_vm0, %v314_v53 }
  0x87   : > { %v320_v57 = vpop.permute.xlu0 %319 }
  0x88   : > { %v516_v10 = vpop.permute.xlu1 %515 }
  0x8b   : > { %v325_v61 = vpop.permute.xlu0 %324 }
  0x8c   : > { %v599_v16 = vpop.permute.xlu1 %598 }
 0x127   : > { %v496_v58 = vpop.f32.mrb[0].mxu0 }
 0x128   : > { %v498_v59 = vpop.f32.mrb[1].mxu0  ;;  %v497_v60 = vadd.f32 %v496_v58, %v320_v57 }
 0x129   : > { %v499_v62 = vadd.f32 %v498_v59, %v320_v57 }
 0x12a   : > { %v507_v3 = vmax.f32 %v497_v60, 0.0 }
 0x12b   : > { %v502_v63 = vpop.f32.mrb[2].mxu0  ;;  %v508_v5 = vmax.f32 %v499_v62, 0.0 }
 0x12c   : > { %v503_v0 = vadd.f32 %v502_v63, %v325_v61  ;;  %v504_v1 = vpop.f32.mrb[3].mxu0 }
 0x12d   : > { %v505_v2 = vadd.f32 %v504_v1, %v325_v61 }
 0x12e   : > { %v509_v4 = vmax.f32 %v503_v0, 0.0 }
 0x12f   : > { %v510_v6 = vmax.f32 %v505_v2, 0.0 }
 0x130   : > { %v823_v7 = vpack.c.bf16 %v509_v4, %v507_v3 }
 0x131   : > { %v821_v8 = vpack.c.bf16 %v510_v6, %v508_v5 }
 0x133   : > { %822 = vmatprep.subr.bf16.mxu1 %v821_v8 }
 0x134   : > { %824 = vmatpush1.bf16.msra.mxu1 %v823_v7 }
 0x137   : > { %734 = vmatmul.mubr.msk.f32.vlgmr.msra.gmra.mrb[0].mxu1 %vm518_vm2, %v511_v9 }
 0x20a   : > { %v588_v11 = vpop.f32.mrb[0].mxu1 }
 0x20b   : > { %v589_v12 = vadd.f32 %v588_v11, %v516_v10  ;;  %v590_v13 = vpop.f32.mrb[1].mxu1 }
 0x20c   : > { %v591_v14 = vadd.f32 %v590_v13, %v516_v10 }
 0x20d   : > { %v593_v15 = vmax.f32 %v589_v12, 0.0 }
 0x20e   : > { %v594_v17 = vmax.f32 %v591_v14, 0.0 }
 0x20f   : > { %v601_v18 = vmul.f32 %v599_v16, %v593_v15 }
 0x210   : > { %v602_v19 = vmul.f32 %v599_v16, %v594_v17 }
 0x211   : > { %v603_v20 = vrot.slane %v601_v18, 4 }
 0x212   : > { %v609_v21 = vrot.slane %v602_v19, 4 }
 0x213   : > { %v604_v22 = vadd.f32 %v603_v20, %v601_v18 }
 0x214   : > { %v610_v23 = vadd.f32 %v609_v21, %v602_v19 }
 0x215   : > { %v605_v24 = vrot.slane %v604_v22, 2 }
 0x216   : > { %v611_v25 = vrot.slane %v610_v23, 2 }
 0x217   : > { %v606_v29 = vadd.f32 %v605_v24, %v604_v22 }
 0x218   : > { %v612_v30 = vadd.f32 %v611_v25, %v610_v23 }
 0x219   : > { %v607_v31 = vrot.slane %v606_v29, 1 }
 0x21a   : > { %v613_v33 = vrot.slane %v612_v30, 1 }
 0x21b   : > { %v608_v36 = vadd.f32 %v607_v31, %v606_v29 }
 0x21c   : > { %v614_v37 = vadd.f32 %v613_v33, %v612_v30 }
 0x21d   : > { %v617_v38 = vadd.f32 %v616_v32, %v608_v36 }
 0x21e   : > { %v618_v39 = vadd.f32 %v616_v32, %v614_v37 }
 0x220   : > { %v621_v41 = vcombine.low %v617_v38, %v618_v39 }
 0x222   : > { %v628_v42 = vrot.slane %v621_v41, %v627_v40 }
 0x224   : > { %v635_v43 = vrot.slane %v628_v42, %v627_v40 }
 0x226   : > { %641 = vst.msk [vmem:[%s279_s6] sm:$0x3] %vm639_vm3, %v635_v43 }
 0x227 PF: > { %s18_s26 = sadd.s32 1, %s844_s26  }
 0x228   : > { %p15_p5 = scmp.ge.s32.totalorder %s18_s26, 4  }
 0x22a   :  { %17 = sbr.rel (!%p15_p5) target bundleno = 2 (0x2), region = 78 }

</bundles_post_ra>
